<compile_context>
chip_gen: v6e
topology: v6e:2x2x1
jax: 0.10.0
libtpu: 0.0.40
codegen_flags: <defaults>
</compile_context>

<pallas_src>
import functools

import jax
import jax.numpy as jnp
from jax.experimental import pallas as pl
from jax.experimental.pallas import tpu as pltpu


def _round_up(x, m):
    return ((x + m - 1) // m) * m


def focal_loss_kernel(x_ref, t_ref, o_ref, *, gamma, n_total, tile_n):
    pid = pl.program_id(0)

    x = x_ref[...].astype(jnp.float32)            # (TILE_N, C) logits (in-register upcast)
    t = t_ref[...]                                # (TILE_N, 1) int32 class ids
    tn, c = x.shape

    # Row validity mask for the ragged/padded last tile.  All reductions below
    # are strictly per-row, and this mask is applied BEFORE the only cross-row
    # reduction (the tile sum) -- do not reorder.
    row_ids = jax.lax.broadcasted_iota(jnp.int32, (tn, 1), 0)
    valid = (pid * tile_n + row_ids) < n_total    # (TILE_N, 1) bool

    cls_ids = jax.lax.broadcasted_iota(jnp.int32, (tn, c), 1)
    ones_c = jnp.ones((c, 1), jnp.float32)        # hoisted reduction column

    # --- log-sum-exp pieces ---------------------------------------------------
    m = jnp.max(x, axis=-1, keepdims=True)        # (TILE_N, 1) -- only XLU lane-reduce
    xm = x - m                                    # (TILE_N, C)
    e = jnp.exp(xm)                               # (TILE_N, C)  EUP stream

    # Lane reductions offloaded to the (otherwise idle) MXU.
    s = jnp.dot(e, ones_c, preferred_element_type=jnp.float32)            # sum_j exp(x-m)
    tgt_shift = jnp.dot(jnp.where(cls_ids == t, xm, 0.0), ones_c,
                        preferred_element_type=jnp.float32)               # x[tgt] - m

    # --- cross entropy + focal weighting ---------------------------------------
    ce = jnp.log(s) - tgt_shift                                           # (TILE_N, 1)
    pt = jnp.clip(jnp.exp(-ce), 1e-5, 1.0 - 1e-5)                         # per-row EUP exp

    w = 1.0 - pt
    if gamma == 2:                       # integer gamma: VPU multiplies, no pow
        focal = w * w * ce
    else:
        focal = w ** jnp.float32(gamma) * ce

    focal = jnp.where(valid, focal, 0.0)

    # Per-tile partial sum -> scalar SMEM output for this grid step.
    o_ref[0, 0] = jnp.sum(focal)


def focal_loss(inputs, targets, gamma=2, tile_n=None):
    """inputs: (N, C) float logits (any float dtype), targets: (N,) integer ids."""
    n, c = inputs.shape
    itemsize = inputs.dtype.itemsize
    sublane = 8 * max(1, 4 // itemsize)           # dtype-aware sublane multiple

    if tile_n is None:
        # ~2 MiB of f32-equivalent intermediates per full-tile temp (scaled by dtype).
        target_bytes = (2 << 20) * itemsize // 4
        tile_n = max(sublane,
                     (target_bytes // max(c * itemsize, 1)) // sublane * sublane)
    tile_n = max(sublane, _round_up(min(tile_n, _round_up(n, sublane)), sublane))

    # Keep >= 2 tiles so the "parallel" axis can shard across v7x's 2 TensorCores.
    if n > 2 * sublane:
        half = max(sublane, _round_up(-(-n // 2), sublane))
        tile_n = min(tile_n, half)

    num_tiles = pl.cdiv(n, tile_n)

    # VMEM budget: 2x double-buffered input/target blocks + ~6 f32 full-tile temps.
    block_bytes = tile_n * c * itemsize
    vmem_est = 2 * (block_bytes + tile_n * 4) + 6 * tile_n * c * 4 + (2 << 20)
    vmem_limit = int(min(max(vmem_est, 32 << 20), 56 << 20))

    t2 = targets.astype(jnp.int32).reshape(n, 1)

    kernel = functools.partial(
        focal_loss_kernel, gamma=gamma, n_total=n, tile_n=tile_n
    )

    partials = pl.pallas_call(
        kernel,
        out_shape=jax.ShapeDtypeStruct((num_tiles, 1), jnp.float32),
        grid=(num_tiles,),
        in_specs=[
            # logits streamed in native dtype (no wrapper upcast)
            pl.BlockSpec((tile_n, c), lambda i: (i, 0)),
            pl.BlockSpec((tile_n, 1), lambda i: (i, 0)),
        ],
        out_specs=pl.BlockSpec((1, 1), lambda i: (i, 0), memory_space=pltpu.SMEM),
        compiler_params=pltpu.CompilerParams(
            dimension_semantics=("parallel",),
            vmem_limit_bytes=vmem_limit,
        ),
        cost_estimate=pl.CostEstimate(
            flops=9 * n * c,
            transcendentals=n * c + 2 * n,
            bytes_accessed=n * c * itemsize + n * 4 + num_tiles * 4,
        ),
    )(inputs, t2)

    # Final mean over the TRUE batch size (padded rows were masked to 0).
    return jnp.sum(partials) / jnp.float32(n)


def focal_loss_ref(inputs, targets, gamma=2):
    """Pure-JAX reference matching the PyTorch module."""
    logp = jax.nn.log_softmax(inputs.astype(jnp.float32), axis=-1)
    ce = -jnp.take_along_axis(logp, targets[:, None].astype(jnp.int32), axis=-1)[:, 0]
    pt = jnp.clip(jnp.exp(-ce), 1e-5, 1.0 - 1e-5)
    return jnp.mean((1.0 - pt) ** gamma * ce)


if __name__ == "__main__":
    key = jax.random.PRNGKey(0)
    k_x, k_t = jax.random.split(key)

    # Small shape consistent with the module (batch of 8 samples, 32 classes).
    N, C = 8, 32
    logits = jax.random.normal(k_x, (N, C), dtype=jnp.float32)
    targets = jax.random.randint(k_t, (N,), 0, C, dtype=jnp.int32)

    loss = jax.block_until_ready(focal_loss(logits, targets, gamma=2))
    ref = focal_loss_ref(logits, targets, gamma=2)
    assert jnp.allclose(loss, ref, rtol=1e-5, atol=1e-6), (loss, ref)

    # Ragged / multi-tile path (N not a multiple of the tile; auto tile sizing).
    N2, C2 = 1000, 32
    k_x2, k_t2 = jax.random.split(jax.random.PRNGKey(1))
    logits2 = jax.random.normal(k_x2, (N2, C2), dtype=jnp.float32)
    targets2 = jax.random.randint(k_t2, (N2,), 0, C2, dtype=jnp.int32)
    loss2 = jax.block_until_ready(focal_loss(logits2, targets2, gamma=2))
    ref2 = focal_loss_ref(logits2, targets2, gamma=2)
    assert jnp.allclose(loss2, ref2, rtol=1e-5, atol=1e-6), (loss2, ref2)

    # bf16 native-dtype streaming path (dtype-aware 16-row sublane tiles).
    logits3 = logits2.astype(jnp.bfloat16)
    loss3 = jax.block_until_ready(focal_loss(logits3, targets2, gamma=2))
    ref3 = focal_loss_ref(logits3, targets2, gamma=2)
    assert jnp.allclose(loss3, ref3, rtol=1e-3, atol=1e-4), (loss3, ref3)

    print("KERNEL_OK")
</pallas_src>

<mosaic_0001>
module attributes {stable_mosaic.version = 11 : i64} {
  func.func @focal_loss_kernel(%arg0: i32, %arg1: memref<8x32xf32, #tpu.memory_space<vmem>>, %arg2: memref<8x1xi32, #tpu.memory_space<vmem>>, %arg3: memref<1x1xf32, #tpu.memory_space<smem>>) attributes {dimension_semantics = [#tpu.dimension_semantics<parallel>], iteration_bounds = array<i64: 1>, scalar_prefetch = 0 : i64, scratch_operands = 0 : i64, tpu.core_type = #tpu.core_type<tc>, window_params = [{transform_indices = @transform_0, window_bounds = array<i64: 8, 32>}, {transform_indices = @transform_1, window_bounds = array<i64: 8, 1>}, {transform_indices = @transform_2, window_bounds = array<i64: 1, 1>}]} {
    %c0 = arith.constant 0 : index
    %c0_0 = arith.constant 0 : index
    %0 = vector.load %arg1[%c0, %c0_0] : memref<8x32xf32, #tpu.memory_space<vmem>>, vector<8x32xf32>
    %c0_1 = arith.constant 0 : index
    %c0_2 = arith.constant 0 : index
    %1 = vector.load %arg2[%c0_1, %c0_2] : memref<8x1xi32, #tpu.memory_space<vmem>>, vector<8x1xi32>
    %2 = tpu.iota {dimensions = array<i32: 0>} : vector<8x1xi32>
    %c8_i32 = arith.constant 8 : i32
    %3 = arith.muli %arg0, %c8_i32 : i32
    %4 = vector.broadcast %3 : i32 to vector<8x1xi32>
    %5 = arith.addi %4, %2 : vector<8x1xi32>
    %c8_i32_3 = arith.constant 8 : i32
    %6 = vector.broadcast %c8_i32_3 : i32 to vector<8x1xi32>
    %7 = arith.cmpi slt, %5, %6 : vector<8x1xi32>
    %8 = tpu.iota {dimensions = array<i32: 1>} : vector<8x32xi32>
    %cst = arith.constant 1.000000e+00 : f32
    %9 = vector.broadcast %cst : f32 to vector<32x1xf32>
    %cst_4 = arith.constant dense<0xFF800000> : vector<8xf32>
    %10 = vector.multi_reduction <maximumf>, %0, %cst_4 [1] : vector<8x32xf32> to vector<8xf32>
    %11 = vector.shape_cast %10 : vector<8xf32> to vector<8x1xf32>
    %12 = vector.broadcast %11 : vector<8x1xf32> to vector<8x32xf32>
    %13 = arith.subf %0, %12 : vector<8x32xf32>
    %14 = math.exp %13 : vector<8x32xf32>
    %cst_5 = arith.constant dense<0.000000e+00> : vector<8x1xf32>
    %15 = tpu.matmul %14, %9, %cst_5 {dimension_numbers = #tpu.dot_dimension_numbers<[1], [0], [0], [1], [0, 0, 1, 1], [], []>} : vector<8x32xf32>, vector<32x1xf32>, vector<8x1xf32> -> vector<8x1xf32>
    %16 = vector.broadcast %1 : vector<8x1xi32> to vector<8x32xi32>
    %17 = arith.cmpi eq, %8, %16 : vector<8x32xi32>
    %cst_6 = arith.constant 0.000000e+00 : f32
    %18 = vector.broadcast %cst_6 : f32 to vector<8x32xf32>
    %19 = arith.select %17, %13, %18 : vector<8x32xi1>, vector<8x32xf32>
    %cst_7 = arith.constant dense<0.000000e+00> : vector<8x1xf32>
    %20 = tpu.matmul %19, %9, %cst_7 {dimension_numbers = #tpu.dot_dimension_numbers<[1], [0], [0], [1], [0, 0, 1, 1], [], []>} : vector<8x32xf32>, vector<32x1xf32>, vector<8x1xf32> -> vector<8x1xf32>
    %21 = math.log %15 : vector<8x1xf32>
    %22 = arith.subf %21, %20 : vector<8x1xf32>
    %cst_8 = arith.constant 0.000000e+00 : f32
    %23 = vector.broadcast %cst_8 : f32 to vector<8x1xf32>
    %24 = arith.subf %23, %22 : vector<8x1xf32>
    %25 = math.exp %24 : vector<8x1xf32>
    %cst_9 = arith.constant 9.99999974E-6 : f32
    %cst_10 = arith.constant 0.999989986 : f32
    %26 = vector.broadcast %cst_9 : f32 to vector<8x1xf32>
    %27 = arith.maximumf %26, %25 : vector<8x1xf32>
    %28 = vector.broadcast %cst_10 : f32 to vector<8x1xf32>
    %29 = arith.minimumf %28, %27 : vector<8x1xf32>
    %cst_11 = arith.constant 1.000000e+00 : f32
    %30 = vector.broadcast %cst_11 : f32 to vector<8x1xf32>
    %31 = arith.subf %30, %29 : vector<8x1xf32>
    %32 = arith.mulf %31, %31 : vector<8x1xf32>
    %33 = arith.mulf %32, %22 : vector<8x1xf32>
    %cst_12 = arith.constant 0.000000e+00 : f32
    %34 = vector.broadcast %cst_12 : f32 to vector<8x1xf32>
    %35 = arith.select %7, %33, %34 : vector<8x1xi1>, vector<8x1xf32>
    %36 = vector.shape_cast %35 : vector<8x1xf32> to vector<1x8x1xf32>
    %cst_13 = arith.constant dense<0.000000e+00> : vector<1xf32>
    %37 = vector.multi_reduction <add>, %36, %cst_13 [1, 2] : vector<1x8x1xf32> to vector<1xf32>
    %38 = vector.shape_cast %37 : vector<1xf32> to vector<1x1x1xf32>
    %39 = vector.extract %38[0, 0, 0] : f32 from vector<1x1x1xf32>
    %c0_14 = arith.constant 0 : index
    %c0_15 = arith.constant 0 : index
    %40 = memref.load %arg3[%c0_14, %c0_15] : memref<1x1xf32, #tpu.memory_space<smem>>
    memref.store %39, %arg3[%c0_14, %c0_15] : memref<1x1xf32, #tpu.memory_space<smem>>
    return
  }
  func.func @transform_0(%arg0: i32) -> (i32, i32) {
    %c0_i32 = arith.constant 0 : i32
    %c0_i32_0 = arith.constant 0 : i32
    return %arg0, %c0_i32 : i32, i32
  }
  func.func @transform_1(%arg0: i32) -> (i32, i32) {
    %c0_i32 = arith.constant 0 : i32
    %c0_i32_0 = arith.constant 0 : i32
    return %arg0, %c0_i32 : i32, i32
  }
  func.func @transform_2(%arg0: i32) -> (i32, i32) {
    %c0_i32 = arith.constant 0 : i32
    %c0_i32_0 = arith.constant 0 : i32
    return %arg0, %c0_i32 : i32, i32
  }
}

</mosaic_0001>

<bundles_post_ra>
// kernel: tpu_custom_call.1
= control target key start
LH: loop header
LB: loop body
LE: loop exit
PB: predicated region body
PF: predicated region fallthrough
CT: control target
= control target key end

     0   :  { %vm22_vm0 = vcmask 261120   ;;  %s308_s0 = inlined_call_operand.vmem [shape: f32[8,32], index: 0, kind: input, shape index: {}]   ;;  %s309_s1 = inlined_call_operand.vmem [shape: s32[8,1], index: 1, kind: input, shape index: {}]   ;;  %s310_s2 = inlined_call_operand.hbm [shape: f32[1,1], index: 2, kind: output, shape index: {}]  }
   0x1   :  { %v12_v0 = vld [vmem:[%s308_s0] sm:$0xff] }
   0x2   :  { %7 = vsyncpa [#allocation3], 0  ;;  %v23_v1 = vsel %vm22_vm0, %v12_v0, -inf  ;;  %v276_v2 = vmov 0   ;;  %v277_v3 = vmov 0.0   ;;  %v278_v4 = vmov 1.0  }
   0x3   :  { %259 = vset.pattern.permute.xlu0 %v276_v2  ;;  %241 = vmatprep.subr.mxu1 %v277_v3  ;;  %v13_v5 = vld [vmem:[%s309_s1] sm:$0xff]  ;;  %vm279_vm1 = vmmov 0   ;;  %v20_v8 = vlaneseq  ;;  %vm192_vm3 = vcmask 7168   ;;  %s280_s12 = smov [#allocation2]  }
   0x4   :  { %24 = vmax.xlane.f32.xlu0 %v23_v1  ;;  %230 = vmatprep.subr.mxu0 %v277_v3 }
   0x5   :  { %242 = vmatpush3.msra.mxu1 %v278_v4  ;;  %231 = vmatpush3.msra.mxu0 %v278_v4  ;;  %v21_v10 = vand.u32 127, %v20_v8 }
   0x6   :  { %243 = vmatprep.subr.mxu1 %v277_v3  ;;  %232 = vmatprep.subr.mxu0 %v277_v3 }
   0x7   :  { %244 = vmatpush3.msra.mxu1 %v278_v4  ;;  %233 = vmatpush3.msra.mxu0 %v278_v4 }
   0x8   :  { %245 = vmatprep.subr.mxu1 %v277_v3  ;;  %234 = vmatprep.subr.mxu0 %v277_v3 }
   0x9   :  { %246 = vmatpush3.msra.mxu1 %v278_v4  ;;  %235 = vmatpush3.msra.mxu0 %v278_v4 }
   0xa   :  { %247 = vmatprep.subr.mxu1 %v277_v3  ;;  %236 = vmatprep.subr.mxu0 %v277_v3 }
   0xb   :  { %248 = vmatpush3.msra.mxu1 %v278_v4  ;;  %249 = vmatprep.mubr.msk.f32.mxu1 %vm279_vm1, %v277_v3 }
   0xc   :  { %237 = vmatpush3.msra.mxu0 %v278_v4  ;;  %238 = vmatprep.mubr.msk.f32.mxu0 %vm279_vm1, %v277_v3 }
  0x1a   :  { %103 = vperm.xlu0 %259, %v13_v5  }
  0x8d   :  { %v25_v6 = vpop.xlane.xlu0 %24 }
  0x8e   :  { %v26_v7 = vsub.f32 %v12_v0, %v25_v6 }
  0x90   :  { %v27_v9 = vmul.f32 1.442695, %v26_v7 }
  0x92   :  { %260 = vpow2.f32 %v27_v9 }
  0x95   :  { %v104_v11 = vpop.permute.xlu0 %103 }
  0x96   :  { %vm105_vm2 = vcmp.eq.s32.totalorder %v21_v10, %v104_v11 }
  0x97   :  { %v106_v12 = vsel %vm105_vm2, %v26_v7, 0.0 }
  0x98   :  { %250 = vmatmul.mubr.msk.f32.vlgmr.msra.gmra.mxu1 %vm22_vm0, %v106_v12 }
  0x9f   :  { %v261_v13 = vpop.eup %260 }
  0xa0   :  { %239 = vmatmul.mubr.msk.f32.vlgmr.msra.gmra.mxu0 %vm22_vm0, %v261_v13 }
 0x158   :  { %v176_v14 = vpop.f32.mrf.mxu1 }
 0x15a   :  { %v251_v15 = vpop.f32.mrf.mxu1 }
 0x160   :  { %v98_v16 = vpop.f32.mrf.mxu0 }
 0x161   :  { %262 = vlog2.f32 %v98_v16 }
 0x162   :  { %v240_v17 = vpop.f32.mrf.mxu0 }
 0x16e   :  { %v263_v18 = vpop.eup %262 }
 0x16f   :  { %v181_v19 = vmul.f32 0.6931472, %v263_v18 }
 0x171   :  { %v182_v20 = vsub.f32 %v181_v19, %v176_v14 }
 0x173   :  { %v183_v21 = vsub.f32 0.0, %v182_v20 }
 0x175   :  { %v184_v22 = vmul.f32 1.442695, %v183_v21 }
 0x177   :  { %264 = vpow2.f32 %v184_v22 }
 0x184   :  { %v265_v23 = vpop.eup %264 }
 0x185   :  { %v186_v24 = vmax.f32 %v265_v23, 1e-05 }
 0x187   :  { %v187_v25 = vmin.f32 %v186_v24, 0.99999 }
 0x189   :  { %v188_v26 = vsub.f32 1.0, %v187_v25 }
 0x18b   :  { %v189_v27 = vmul.f32 %v188_v26, %v188_v26 }
 0x18d   :  { %v190_v28 = vmul.f32 %v189_v27, %v182_v20 }
 0x18f   :  { %v193_v29 = vsel %vm192_vm3, %v190_v28, 0.0 }
 0x190   :  { %194 = vadd.xlane.f32.xlu1 %v193_v29 }
 0x219   :  { %v195_v30 = vpop.xlane.xlu1 %194 }
 0x21a   :  { %v196_v31 = vrot.slane %v195_v30, 4 }
 0x21c   :  { %v197_v32 = vadd.f32 %v196_v31, %v195_v30 }
 0x21e   :  { %v198_v33 = vrot.slane %v197_v32, 2 }
 0x220   :  { %v199_v34 = vadd.f32 %v198_v33, %v197_v32 }
 0x222   :  { %v200_v35 = vrot.slane %v199_v34, 1 }
 0x224   :  { %v201_v36 = vadd.f32 %v200_v35, %v199_v34 }
 0x226   :  { %252 = vpush %v201_v36 }
 0x257   :  { %s253_s1 = spop %252 }
 0x258   :  { %204 = sst [smem:[#allocation2]] %s253_s1 }
 0x259   :  { %212 = dma.smem_to_hbm %s280_s12, 16, %s310_s2, [#allocation3]  }
 0x25a   :  { %274 = dma.done.wait [#allocation3], 16  }
 0x25b   :  { %275 = vsyncadd [#allocation3], 4294967280 }
 0x25c   :  { %216 = sfence }
 0x25d   :  { %217 = vsyncpa [#allocation3], 1 }

</bundles_post_ra>
